<compile_context>
chip_gen: v7x
topology: tpu7x:2x2x1
jax: 0.10.0
libtpu: 0.0.40
codegen_flags: <defaults>
</compile_context>

<pallas_src>
import functools

import jax
import jax.numpy as jnp
from jax.experimental import pallas as pl
from jax.experimental.pallas import tpu as pltpu


def _round_up(x, m):
    return ((x + m - 1) // m) * m


def _conv_hswish_relu_kernel(x_ref, h_ref, w_ref, b_ref, o_ref, stack_ref,
                             *, offsets, tile_m, c_in):
    """One spatial tile of fused conv (single K matmul) + bias + relu(hardswish).

    x_ref:     (C_in, TILE_M)        current flattened-spatial tile (batch folded in)
    h_ref:     (C_in, HALO)          halo lanes just past the tile
    w_ref:     (C_out, KH*KW*C_in)   reshaped weights
    b_ref:     (C_out, 1)
    o_ref:     (C_out, TILE_M)       lane-dense output tile
    stack_ref: (KH*KW*C_in, TILE_M)  VMEM scratch holding the shifted-slice stack
    """
    # (C_in, TILE_M + HALO): tile plus just enough halo to cover every shift.
    xw = jnp.concatenate([x_ref[...], h_ref[...]], axis=-1)

    # Build the K = KH*KW*C_in contraction operand; static Python loop, static slices.
    for k, s in enumerate(offsets):
        stack_ref[k * c_in:(k + 1) * c_in, :] = xw[:, s:s + tile_m]

    # Single MXU matmul: (C_out, K) @ (K, TILE_M) -> (C_out, TILE_M).
    acc = jnp.dot(w_ref[...], stack_ref[...], preferred_element_type=jnp.float32)
    acc = acc + b_ref[...]                        # (C_out, 1) broadcast over lanes

    # relu(hardswish(x)) collapses to max(x, 0) * min(x + 3, 6) / 6.
    o_ref[...] = (jnp.maximum(acc, 0.0) * jnp.minimum(acc + 3.0, 6.0)
                  * (1.0 / 6.0)).astype(o_ref.dtype)


@functools.partial(jax.jit, static_argnames=("tile_m",))
def conv_hardswish_relu(x_nchw, weight, bias, tile_m=1024):
    """x_nchw: (N, C_in, H, W); weight: (C_out, C_in, KH, KW); bias: (C_out,)."""
    N, C_in, H, W = x_nchw.shape
    C_out, C_in_w, KH, KW = weight.shape
    assert C_in == C_in_w
    OH, OW = H - KH + 1, W - KW + 1

    M = N * H * W                                 # batch folded into the lane axis
    max_shift = (KH - 1) * W + (KW - 1)           # largest lane lookahead needed
    halo = _round_up(max(max_shift, 1), 128)      # lane-aligned halo (>= 128)

    # Lane-aligned spatial tile; force halo | tile_m so the halo BlockSpec
    # index math is exact, and cap by the (padded) problem size.
    tm = max(128, min(tile_m, _round_up(M, 128)))
    tm = _round_up(tm, halo)
    num_tiles = pl.cdiv(M, tm)
    L = num_tiles * tm + halo                     # only `halo` extra lanes of pad

    if x_nchw.dtype != jnp.float32:
        x_nchw = x_nchw.astype(jnp.float32)
    # (N, C_in, H, W) -> (C_in, N*H*W).  Cross-image "bleed" of the shifted
    # slices only affects output rows discarded by the final :OH/:OW slice.
    x_flat = jnp.transpose(x_nchw, (1, 0, 2, 3)).reshape(C_in, M)
    x_pad = jnp.pad(x_flat, ((0, 0), (0, L - M)))

    # (C_out, C_in, KH, KW) -> (C_out, KH*KW*C_in), column q = (i*KW+j)*C_in + c,
    # matching stack row k*C_in + c with shift offsets[k] = i*W + j.
    w_r = jnp.transpose(weight, (0, 2, 3, 1)).reshape(C_out, KH * KW * C_in)
    w_r = w_r.astype(jnp.float32)
    b_r = bias.reshape(C_out, 1).astype(jnp.float32)

    offsets = tuple(i * W + j for i in range(KH) for j in range(KW))
    kernel = functools.partial(_conv_hswish_relu_kernel,
                               offsets=offsets, tile_m=tm, c_in=C_in)
    ratio = tm // halo                            # halo blocks per spatial tile

    out = pl.pallas_call(
        kernel,
        out_shape=jax.ShapeDtypeStruct((C_out, num_tiles * tm), jnp.float32),
        grid=(num_tiles,),
        in_specs=[
            pl.BlockSpec((C_in, tm), lambda i: (0, i)),                   # tile
            pl.BlockSpec((C_in, halo), lambda i: (0, (i + 1) * ratio)),   # halo only
            pl.BlockSpec((C_out, KH * KW * C_in), lambda i: (0, 0)),      # weights
            pl.BlockSpec((C_out, 1), lambda i: (0, 0)),                   # bias
        ],
        out_specs=pl.BlockSpec((C_out, tm), lambda i: (0, i)),
        scratch_shapes=[pltpu.VMEM((KH * KW * C_in, tm), jnp.float32)],
        compiler_params=pltpu.CompilerParams(
            dimension_semantics=("parallel",)),
    )(x_pad, x_pad, w_r, b_r)

    # (C_out, M) -> valid NCHW output via cheap slice / reshape / small transpose.
    y = out[:, :M].reshape(C_out, N, H, W)[:, :, :OH, :OW]
    return jnp.transpose(y, (1, 0, 2, 3))


def _reference(x_nchw, weight, bias):
    # Pure-JAX reference for a sanity check.
    y = jax.lax.conv_general_dilated(
        x_nchw, weight, window_strides=(1, 1), padding="VALID",
        dimension_numbers=("NCHW", "OIHW", "NCHW"))
    y = y + bias.reshape(1, -1, 1, 1)
    hs = y * jnp.clip(y + 3.0, 0.0, 6.0) / 6.0
    return jnp.maximum(hs, 0.0)


if __name__ == "__main__":
    in_channels, out_channels, kernel_size = 3, 16, 3
    N, H, W = 2, 16, 16

    key = jax.random.PRNGKey(0)
    kx, kw, kb = jax.random.split(key, 3)

    # Deterministic PyTorch-like init: uniform(-1/sqrt(fan_in), 1/sqrt(fan_in)).
    fan_in = in_channels * kernel_size * kernel_size
    bound = 1.0 / (fan_in ** 0.5)
    weight = jax.random.uniform(
        kw, (out_channels, in_channels, kernel_size, kernel_size),
        minval=-bound, maxval=bound, dtype=jnp.float32)
    bias = jax.random.uniform(
        kb, (out_channels,), minval=-bound, maxval=bound, dtype=jnp.float32)

    x = jax.random.normal(kx, (N, in_channels, H, W), dtype=jnp.float32)

    out = conv_hardswish_relu(x, weight, bias)
    out = jax.block_until_ready(out)

    ref = _reference(x, weight, bias)
    assert out.shape == (N, out_channels, H - kernel_size + 1, W - kernel_size + 1)
    assert jnp.allclose(out, ref, atol=1e-4, rtol=1e-4), "mismatch vs reference"

    print("KERNEL_OK")
</pallas_src>

<mosaic_0001>
module attributes {stable_mosaic.version = 11 : i64} {
  func.func @_conv_hswish_relu_kernel(%arg0: i32, %arg1: memref<3x512xf32, #tpu.memory_space<vmem>>, %arg2: memref<3x128xf32, #tpu.memory_space<vmem>>, %arg3: memref<16x27xf32, #tpu.memory_space<vmem>>, %arg4: memref<16x1xf32, #tpu.memory_space<vmem>>, %arg5: memref<16x512xf32, #tpu.memory_space<vmem>>, %arg6: memref<27x512xf32, #tpu.memory_space<vmem>>) attributes {dimension_semantics = [#tpu.dimension_semantics<parallel>], iteration_bounds = array<i64: 1>, scalar_prefetch = 0 : i64, scratch_operands = 1 : i64, tpu.core_type = #tpu.core_type<tc>, window_params = [{transform_indices = @transform_0, window_bounds = array<i64: 3, 512>}, {transform_indices = @transform_1, window_bounds = array<i64: 3, 128>}, {pipeline_mode = #tpu.pipeline_mode<synchronous>, transform_indices = @transform_2, window_bounds = array<i64: 16, 27>}, {pipeline_mode = #tpu.pipeline_mode<synchronous>, transform_indices = @transform_3, window_bounds = array<i64: 16, 1>}, {transform_indices = @transform_4, window_bounds = array<i64: 16, 512>}]} {
    %c0 = arith.constant 0 : index
    %c0_0 = arith.constant 0 : index
    %0 = vector.load %arg1[%c0, %c0_0] : memref<3x512xf32, #tpu.memory_space<vmem>>, vector<3x512xf32>
    %c0_1 = arith.constant 0 : index
    %c0_2 = arith.constant 0 : index
    %1 = vector.load %arg2[%c0_1, %c0_2] : memref<3x128xf32, #tpu.memory_space<vmem>>, vector<3x128xf32>
    %2 = tpu.concatenate %0, %1 in 1 : vector<3x512xf32>, vector<3x128xf32> -> vector<3x640xf32>
    %3 = vector.extract_strided_slice %2 {offsets = [0, 0], sizes = [3, 512], strides = [1, 1]} : vector<3x640xf32> to vector<3x512xf32>
    %c0_3 = arith.constant 0 : index
    %c0_4 = arith.constant 0 : index
    %4 = vector.load %arg6[%c0_3, %c0_4] : memref<27x512xf32, #tpu.memory_space<vmem>>, vector<3x512xf32>
    tpu.vector_store %arg6[%c0_3, %c0_4], %3 {strides = array<i32>} : memref<27x512xf32, #tpu.memory_space<vmem>>, vector<3x512xf32>,
    %5 = vector.extract_strided_slice %2 {offsets = [0, 1], sizes = [3, 512], strides = [1, 1]} : vector<3x640xf32> to vector<3x512xf32>
    %c3 = arith.constant 3 : index
    %c0_5 = arith.constant 0 : index
    %6 = vector.load %arg6[%c3, %c0_5] : memref<27x512xf32, #tpu.memory_space<vmem>>, vector<3x512xf32>
    tpu.vector_store %arg6[%c3, %c0_5], %5 {strides = array<i32>} : memref<27x512xf32, #tpu.memory_space<vmem>>, vector<3x512xf32>,
    %7 = vector.extract_strided_slice %2 {offsets = [0, 2], sizes = [3, 512], strides = [1, 1]} : vector<3x640xf32> to vector<3x512xf32>
    %c6 = arith.constant 6 : index
    %c0_6 = arith.constant 0 : index
    %8 = vector.load %arg6[%c6, %c0_6] : memref<27x512xf32, #tpu.memory_space<vmem>>, vector<3x512xf32>
    tpu.vector_store %arg6[%c6, %c0_6], %7 {strides = array<i32>} : memref<27x512xf32, #tpu.memory_space<vmem>>, vector<3x512xf32>,
    %9 = vector.extract_strided_slice %2 {offsets = [0, 16], sizes = [3, 512], strides = [1, 1]} : vector<3x640xf32> to vector<3x512xf32>
    %c9 = arith.constant 9 : index
    %c0_7 = arith.constant 0 : index
    %10 = vector.load %arg6[%c9, %c0_7] : memref<27x512xf32, #tpu.memory_space<vmem>>, vector<3x512xf32>
    tpu.vector_store %arg6[%c9, %c0_7], %9 {strides = array<i32>} : memref<27x512xf32, #tpu.memory_space<vmem>>, vector<3x512xf32>,
    %11 = vector.extract_strided_slice %2 {offsets = [0, 17], sizes = [3, 512], strides = [1, 1]} : vector<3x640xf32> to vector<3x512xf32>
    %c12 = arith.constant 12 : index
    %c0_8 = arith.constant 0 : index
    %12 = vector.load %arg6[%c12, %c0_8] : memref<27x512xf32, #tpu.memory_space<vmem>>, vector<3x512xf32>
    tpu.vector_store %arg6[%c12, %c0_8], %11 {strides = array<i32>} : memref<27x512xf32, #tpu.memory_space<vmem>>, vector<3x512xf32>,
    %13 = vector.extract_strided_slice %2 {offsets = [0, 18], sizes = [3, 512], strides = [1, 1]} : vector<3x640xf32> to vector<3x512xf32>
    %c15 = arith.constant 15 : index
    %c0_9 = arith.constant 0 : index
    %14 = vector.load %arg6[%c15, %c0_9] : memref<27x512xf32, #tpu.memory_space<vmem>>, vector<3x512xf32>
    tpu.vector_store %arg6[%c15, %c0_9], %13 {strides = array<i32>} : memref<27x512xf32, #tpu.memory_space<vmem>>, vector<3x512xf32>,
    %15 = vector.extract_strided_slice %2 {offsets = [0, 32], sizes = [3, 512], strides = [1, 1]} : vector<3x640xf32> to vector<3x512xf32>
    %c18 = arith.constant 18 : index
    %c0_10 = arith.constant 0 : index
    %16 = vector.load %arg6[%c18, %c0_10] : memref<27x512xf32, #tpu.memory_space<vmem>>, vector<3x512xf32>
    tpu.vector_store %arg6[%c18, %c0_10], %15 {strides = array<i32>} : memref<27x512xf32, #tpu.memory_space<vmem>>, vector<3x512xf32>,
    %17 = vector.extract_strided_slice %2 {offsets = [0, 33], sizes = [3, 512], strides = [1, 1]} : vector<3x640xf32> to vector<3x512xf32>
    %c21 = arith.constant 21 : index
    %c0_11 = arith.constant 0 : index
    %18 = vector.load %arg6[%c21, %c0_11] : memref<27x512xf32, #tpu.memory_space<vmem>>, vector<3x512xf32>
    tpu.vector_store %arg6[%c21, %c0_11], %17 {strides = array<i32>} : memref<27x512xf32, #tpu.memory_space<vmem>>, vector<3x512xf32>,
    %19 = vector.extract_strided_slice %2 {offsets = [0, 34], sizes = [3, 512], strides = [1, 1]} : vector<3x640xf32> to vector<3x512xf32>
    %c24 = arith.constant 24 : index
    %c0_12 = arith.constant 0 : index
    %20 = vector.load %arg6[%c24, %c0_12] : memref<27x512xf32, #tpu.memory_space<vmem>>, vector<3x512xf32>
    tpu.vector_store %arg6[%c24, %c0_12], %19 {strides = array<i32>} : memref<27x512xf32, #tpu.memory_space<vmem>>, vector<3x512xf32>,
    %c0_13 = arith.constant 0 : index
    %c0_14 = arith.constant 0 : index
    %21 = vector.load %arg3[%c0_13, %c0_14] : memref<16x27xf32, #tpu.memory_space<vmem>>, vector<16x27xf32>
    %c0_15 = arith.constant 0 : index
    %c0_16 = arith.constant 0 : index
    %22 = vector.load %arg6[%c0_15, %c0_16] : memref<27x512xf32, #tpu.memory_space<vmem>>, vector<27x512xf32>
    %cst = arith.constant dense<0.000000e+00> : vector<16x512xf32>
    %23 = tpu.matmul %21, %22, %cst {dimension_numbers = #tpu.dot_dimension_numbers<[1], [0], [0], [1], [0, 0, 1, 1], [], []>} : vector<16x27xf32>, vector<27x512xf32>, vector<16x512xf32> -> vector<16x512xf32>
    %c0_17 = arith.constant 0 : index
    %c0_18 = arith.constant 0 : index
    %24 = vector.load %arg4[%c0_17, %c0_18] : memref<16x1xf32, #tpu.memory_space<vmem>>, vector<16x1xf32>
    %25 = vector.broadcast %24 : vector<16x1xf32> to vector<16x512xf32>
    %26 = arith.addf %23, %25 : vector<16x512xf32>
    %cst_19 = arith.constant 0.000000e+00 : f32
    %27 = vector.broadcast %cst_19 : f32 to vector<16x512xf32>
    %28 = arith.maximumf %26, %27 : vector<16x512xf32>
    %cst_20 = arith.constant 3.000000e+00 : f32
    %29 = vector.broadcast %cst_20 : f32 to vector<16x512xf32>
    %30 = arith.addf %26, %29 : vector<16x512xf32>
    %cst_21 = arith.constant 6.000000e+00 : f32
    %31 = vector.broadcast %cst_21 : f32 to vector<16x512xf32>
    %32 = arith.minimumf %30, %31 : vector<16x512xf32>
    %33 = arith.mulf %28, %32 : vector<16x512xf32>
    %cst_22 = arith.constant 0.166666672 : f32
    %34 = vector.broadcast %cst_22 : f32 to vector<16x512xf32>
    %35 = arith.mulf %33, %34 : vector<16x512xf32>
    %c0_23 = arith.constant 0 : index
    %c0_24 = arith.constant 0 : index
    %36 = vector.load %arg5[%c0_23, %c0_24] : memref<16x512xf32, #tpu.memory_space<vmem>>, vector<16x512xf32>
    tpu.vector_store %arg5[%c0_23, %c0_24], %35 {strides = array<i32>} : memref<16x512xf32, #tpu.memory_space<vmem>>, vector<16x512xf32>,
    return
  }
  func.func @transform_0(%arg0: i32) -> (i32, i32) {
    %c0_i32 = arith.constant 0 : i32
    %c0_i32_0 = arith.constant 0 : i32
    return %c0_i32, %arg0 : i32, i32
  }
  func.func @transform_1(%arg0: i32) -> (i32, i32) {
    %c1_i32 = arith.constant 1 : i32
    %0 = arith.addi %arg0, %c1_i32 : i32
    %c4_i32 = arith.constant 4 : i32
    %1 = arith.muli %0, %c4_i32 : i32
    %c0_i32 = arith.constant 0 : i32
    %c0_i32_0 = arith.constant 0 : i32
    return %c0_i32, %1 : i32, i32
  }
  func.func @transform_2(%arg0: i32) -> (i32, i32) {
    %c0_i32 = arith.constant 0 : i32
    %c0_i32_0 = arith.constant 0 : i32
    %c0_i32_1 = arith.constant 0 : i32
    return %c0_i32, %c0_i32_0 : i32, i32
  }
  func.func @transform_3(%arg0: i32) -> (i32, i32) {
    %c0_i32 = arith.constant 0 : i32
    %c0_i32_0 = arith.constant 0 : i32
    %c0_i32_1 = arith.constant 0 : i32
    return %c0_i32, %c0_i32_0 : i32, i32
  }
  func.func @transform_4(%arg0: i32) -> (i32, i32) {
    %c0_i32 = arith.constant 0 : i32
    %c0_i32_0 = arith.constant 0 : i32
    return %c0_i32, %arg0 : i32, i32
  }
}

</mosaic_0001>

<bundles_post_ra>
// kernel: conv_hardswish_relu.1
= control target key start
LH: loop header
LB: loop body
LE: loop exit
PB: predicated region body
PF: predicated region fallthrough
CT: control target
= control target key end

     0   :  { %s588_s21 = smov 112   ;;  %s589_s22 = smov 111   ;;  %v594_v38 = vmov 0.0   ;;  %v595_v39 = vmov 0   ;;  %vm68_vm0 = vcmask 1039360   ;;  %vm96_vm1 = vcmask 1031168   ;;  %s788_s1 = inlined_call_operand.vmem [shape: f32[3,640], index: 1, kind: input, shape index: {}, may-alias: {0,1}]   ;;  %s789_s0 = inlined_call_operand.vmem [shape: f32[3,640], index: 0, kind: input, shape index: {}, may-alias: {0,1}]   ;;  %s790_s3 = inlined_call_operand.vmem [shape: f32[16,1], index: 3, kind: input, shape index: {}]   ;;  %s791_s2 = inlined_call_operand.vmem [shape: f32[16,27], index: 2, kind: input, shape index: {}]   ;;  %s792_s4 = inlined_call_operand.vmem [shape: f32[16,512], index: 4, kind: output, shape index: {}]  }
   0x1   :  { %v625_v0 = vld [vmem:[%s788_s1 + $0x10] sm:$0x7]  ;;  %v630_v1 = vld [vmem:[%s789_s0 + $0x8] sm:$0x77]  ;;  %v635_v2 = vld [vmem:[%s789_s0] sm:$0x77]  ;;  %471 = vmatprep.mubr.f32.mxu1 %v594_v38  ;;  %394 = vmatprep.mubr.f32.mxu0 %v594_v38 }
   0x2   :  { %v57_v3 = vrot.slane %v625_v0, 5  ;;  %v55_v4 = vrot.slane %v630_v1, 5  ;;  %48 = vst [vmem:[#allocation2] sm:$0x7] %v635_v2  ;;  %50 = vst [vmem:[#allocation2 + $0x10] sm:$0x7] %v630_v1  ;;  %v643_v5 = vcombine.high %v630_v1, %v630_v1  ;;  %v647_v6 = vcombine.high %v635_v2, %v635_v2  ;;  %582 = vset.pattern.permute.xlu0 %v595_v39 }
   0x3   :  { %s586_s1 = smov 127   ;;  %v83_v9 = vrot.slane %v630_v1, 2  ;;  %s587_s0 = smov 126   ;;  %v85_v11 = vrot.slane %v625_v0, 2  ;;  %v115_v13 = vrot.slane %v630_v1, 7  ;;  %v117_v15 = vrot.slane %v625_v0, 7  ;;  %583 = vset.pattern.permute.xlu1 %v595_v39 }
   0x4   :  { %66 = vrot.lane.b32.xlu1 %v57_v3, %s586_s1  ;;  %62 = vrot.lane.b32.xlu0 %v55_v4, %s586_s1  ;;  %v56_v7 = vrot.slane %v643_v5, 5  ;;  %51 = vst [vmem:[#allocation2 + $0x18] sm:$0x7] %v643_v5  ;;  %v54_v8 = vrot.slane %v647_v6, 5  ;;  %49 = vst [vmem:[#allocation2 + $0x8] sm:$0x7] %v647_v6 }
   0x5   :  { %v82_v10 = vrot.slane %v647_v6, 2  ;;  %v84_v12 = vrot.slane %v643_v5, 2  ;;  %v114_v14 = vrot.slane %v647_v6, 7  ;;  %v116_v16 = vrot.slane %v643_v5, 7  ;;  %s590_s23 = smov 110   ;;  %s591_s24 = smov 96  }
   0x6   :  { %v143_v17 = vrot.slane %v630_v1, 4  ;;  %v145_v18 = vrot.slane %v625_v0, 4  ;;  %v171_v19 = vrot.slane %v630_v1, 1  ;;  %v170_v20 = vrot.slane %v647_v6, 1  ;;  %s592_s25 = smov 95   ;;  %s593_s26 = smov 94  }
   0x7   :  { %v173_v21 = vrot.slane %v625_v0, 1  ;;  %v172_v22 = vrot.slane %v643_v5, 1  ;;  %v81_v23 = vrot.slane %v635_v2, 2  ;;  %v53_v24 = vrot.slane %v635_v2, 5  ;;  %v298_v40 = vld [vmem:[%s790_s3] sm:$0xff]  ;;  %v299_v41 = vld [vmem:[%s790_s3 + $0x8] sm:$0xff] }
   0x8   :  { %64 = vrot.lane.b32.xlu1 %v56_v7, %s586_s1  ;;  %60 = vrot.lane.b32.xlu0 %v54_v8, %s586_s1  ;;  %v141_v25 = vrot.slane %v635_v2, 4  ;;  %v113_v26 = vrot.slane %v635_v2, 7  ;;  %v202_v27 = vrot.slane %v647_v6, 6  ;;  %v169_v28 = vrot.slane %v635_v2, 1 }
   0x9   :  { %v204_v29 = vrot.slane %v643_v5, 6  ;;  %v203_v30 = vrot.slane %v630_v1, 6  ;;  %v230_v31 = vrot.slane %v647_v6, 3  ;;  %v205_v32 = vrot.slane %v625_v0, 6 }
   0xa   :  { %v232_v33 = vrot.slane %v643_v5, 3  ;;  %v231_v34 = vrot.slane %v630_v1, 3  ;;  %v233_v35 = vrot.slane %v625_v0, 3  ;;  %v201_v36 = vrot.slane %v635_v2, 6 }
   0xb   :  { %v229_v37 = vrot.slane %v635_v2, 3  ;;  %vm128_vm2 = vcmask 916480   ;;  %vm156_vm3 = vcmask 908288   ;;  %vm184_vm4 = vcmask 900096  }
   0xc   :  { %90 = vrot.lane.b32.xlu1 %v83_v9, %s587_s0  ;;  %88 = vrot.lane.b32.xlu0 %v82_v10, %s587_s0  ;;  %vm216_vm5 = vcmask 785408   ;;  %vm244_vm6 = vcmask 777216   ;;  %vm267_vm7 = vcmask 769024   ;;  %vm317_vm8 = vcmask 1042432  }
   0xd   :  { %vm596_vm9 = vmmov 1   ;;  %vm310_vm11 = vcmask 220160  }
   0xe   :  { %vm744_vm10 = vmpackc.low %vm317_vm8, %vm596_vm9 }
  0x10   :  { %94 = vrot.lane.b32.xlu1 %v85_v11, %s587_s0  ;;  %92 = vrot.lane.b32.xlu0 %v84_v12, %s587_s0 }
  0x14   :  { %122 = vrot.lane.b32.xlu1 %v115_v13, %s588_s21  ;;  %120 = vrot.lane.b32.xlu0 %v114_v14, %s588_s21 }
  0x18   :  { %126 = vrot.lane.b32.xlu1 %v117_v15, %s588_s21  ;;  %124 = vrot.lane.b32.xlu0 %v116_v16, %s588_s21 }
  0x1c   :  { %150 = vrot.lane.b32.xlu1 %v143_v17, %s589_s22  ;;  %148 = vrot.lane.b32.xlu0 %v647_v6, %s589_s22 }
  0x20   :  { %154 = vrot.lane.b32.xlu1 %v145_v18, %s589_s22  ;;  %152 = vrot.lane.b32.xlu0 %v643_v5, %s589_s22 }
  0x24   :  { %178 = vrot.lane.b32.xlu1 %v171_v19, %s590_s23  ;;  %176 = vrot.lane.b32.xlu0 %v170_v20, %s590_s23 }
  0x28   :  { %182 = vrot.lane.b32.xlu1 %v173_v21, %s590_s23  ;;  %180 = vrot.lane.b32.xlu0 %v172_v22, %s590_s23 }
  0x2c   :  { %86 = vrot.lane.b32.xlu1 %v81_v23, %s587_s0  ;;  %58 = vrot.lane.b32.xlu0 %v53_v24, %s586_s1 }
  0x30   :  { %146 = vrot.lane.b32.xlu1 %v141_v25, %s589_s22  ;;  %118 = vrot.lane.b32.xlu0 %v113_v26, %s588_s21 }
  0x34   :  { %208 = vrot.lane.b32.xlu1 %v202_v27, %s591_s24  ;;  %174 = vrot.lane.b32.xlu0 %v169_v28, %s590_s23 }
  0x38   :  { %212 = vrot.lane.b32.xlu1 %v204_v29, %s591_s24  ;;  %210 = vrot.lane.b32.xlu0 %v203_v30, %s591_s24 }
  0x3c   :  { %236 = vrot.lane.b32.xlu1 %v230_v31, %s592_s25  ;;  %214 = vrot.lane.b32.xlu0 %v205_v32, %s591_s24 }
  0x40   :  { %240 = vrot.lane.b32.xlu1 %v232_v33, %s592_s25  ;;  %238 = vrot.lane.b32.xlu0 %v231_v34, %s592_s25 }
  0x44   :  { %259 = vrot.lane.b32.xlu1 %v647_v6, %s593_s26  ;;  %242 = vrot.lane.b32.xlu0 %v233_v35, %s592_s25 }
  0x48   :  { %263 = vrot.lane.b32.xlu1 %v643_v5, %s593_s26  ;;  %261 = vrot.lane.b32.xlu0 %v630_v1, %s593_s26 }
  0x4c   :  { %206 = vrot.lane.b32.xlu1 %v201_v36, %s591_s24  ;;  %265 = vrot.lane.b32.xlu0 %v625_v0, %s593_s26 }
  0x50   :  { %257 = vrot.lane.b32.xlu1 %v635_v2, %s593_s26  ;;  %234 = vrot.lane.b32.xlu0 %v229_v37, %s592_s25 }
  0x54   :  { %302 = vperm.xlu0 %582, %v298_v40   ;;  %307 = vperm.xlu1 %583, %v299_v41  }
  0x76   :  { %v67_v42 = vpop.permute.xlu1 %66  ;;  %v63_v43 = vpop.permute.xlu0 %62 }
  0x7a   :  { %v65_v44 = vpop.permute.xlu1 %64  ;;  %v61_v45 = vpop.permute.xlu0 %60 }
  0x7b   :  { %v71_v46 = vsel %vm68_vm0, %v63_v43, %v65_v44  ;;  %v72_v47 = vsel %vm68_vm0, %v65_v44, %v67_v42  ;;  %v70_v48 = vsel %vm68_vm0, %v61_v45, %v63_v43 }
  0x7c   :  { %79 = vst [vmem:[#allocation2 + $0x10] sm:$0x38] %v71_v46  ;;  %80 = vst [vmem:[#allocation2 + $0x18] sm:$0x38] %v72_v47 }
  0x7d   :  { %78 = vst [vmem:[#allocation2 + $0x8] sm:$0x38] %v70_v48 }
  0x7e   :  { %v91_v49 = vpop.permute.xlu1 %90  ;;  %v89_v50 = vpop.permute.xlu0 %88 }
  0x7f   :  { %v98_v51 = vsel %vm96_vm1, %v89_v50, %v91_v49 }
  0x80   :  { %106 = vst [vmem:[#allocation2 + $0x28] ss:$-28 sps:$4 sm:$0xc1] %v98_v51  }
  0x82   :  { %v95_v52 = vpop.permute.xlu1 %94  ;;  %v93_v53 = vpop.permute.xlu0 %92 }
  0x83   :  { %v99_v54 = vsel %vm96_vm1, %v91_v49, %v93_v53  ;;  %v100_v55 = vsel %vm96_vm1, %v93_v53, %v95_v52 }
  0x84   :  { %107 = vst [vmem:[#allocation2 + $0x30] ss:$-28 sps:$4 sm:$0xc1] %v99_v54   ;;  %108 = vst [vmem:[#allocation2 + $0x38] ss:$-28 sps:$4 sm:$0xc1] %v100_v55  }
  0x86   :  { %v123_v56 = vpop.permute.xlu1 %122  ;;  %v121_v57 = vpop.permute.xlu0 %120 }
  0x87   :  { %v130_v58 = vsel %vm128_vm2, %v121_v57, %v123_v56  ;;  %v283_v17 = vld [vmem:[#allocation2 + $0x8] sm:$0xff] }
  0x88   :  { %138 = vst [vmem:[#allocation2 + $0x28] sm:$0xe] %v130_v58 }
  0x8a   :  { %v127_v59 = vpop.permute.xlu1 %126  ;;  %v125_v60 = vpop.permute.xlu0 %124 }
  0x8b   :  { %v131_v61 = vsel %vm128_vm2, %v123_v56, %v125_v60  ;;  %v132_v62 = vsel %vm128_vm2, %v125_v60, %v127_v59  ;;  %v285_v22 = vld [vmem:[#allocation2 + $0x18] sm:$0xff]  ;;  %v284_v26 = vld [vmem:[#allocation2 + $0x10] sm:$0xff] }
  0x8c   :  { %139 = vst [vmem:[#allocation2 + $0x30] sm:$0xe] %v131_v61  ;;  %140 = vst [vmem:[#allocation2 + $0x38] sm:$0xe] %v132_v62 }
  0x8e   :  { %v151_v63 = vpop.permute.xlu1 %150  ;;  %v149_v0 = vpop.permute.xlu0 %148 }
  0x8f   :  { %v158_v1 = vsel %vm156_vm3, %v149_v0, %v151_v63 }
  0x90   :  { %166 = vst [vmem:[#allocation2 + $0x28] sm:$0x70] %v158_v1 }
  0x92   :  { %v155_v2 = vpop.permute.xlu1 %154  ;;  %v153_v3 = vpop.permute.xlu0 %152 }
  0x93   :  { %v159_v4 = vsel %vm156_vm3, %v151_v63, %v153_v3  ;;  %v160_v5 = vsel %vm156_vm3, %v153_v3, %v155_v2 }
  0x94   :  { %167 = vst [vmem:[#allocation2 + $0x30] sm:$0x70] %v159_v4  ;;  %168 = vst [vmem:[#allocation2 + $0x38] sm:$0x70] %v160_v5 }
  0x96   :  { %v179_v6 = vpop.permute.xlu1 %178  ;;  %v177_v7 = vpop.permute.xlu0 %176 }
  0x97   :  { %v186_v8 = vsel %vm184_vm4, %v177_v7, %v179_v6 }
  0x98   :  { %194 = vst [vmem:[#allocation2 + $0x48] ss:$-28 sps:$4 sm:$0x83] %v186_v8  }
  0x9a   :  { %v183_v9 = vpop.permute.xlu1 %182  ;;  %v181_v10 = vpop.permute.xlu0 %180 }
  0x9b   :  { %v187_v11 = vsel %vm184_vm4, %v179_v6, %v181_v10  ;;  %v188_v12 = vsel %vm184_vm4, %v181_v10, %v183_v9 }
  0x9c   :  { %195 = vst [vmem:[#allocation2 + $0x50] ss:$-28 sps:$4 sm:$0x83] %v187_v11   ;;  %196 = vst [vmem:[#allocation2 + $0x58] ss:$-28 sps:$4 sm:$0x83] %v188_v12  }
  0x9d   :  { %v280_v11 = vld [vmem:[%s791_s2] sm:$0xff] }
  0x9e   :  { %v87_v13 = vpop.permute.xlu1 %86  ;;  %v59_v14 = vpop.permute.xlu0 %58 }
  0x9f   :  { %v97_v15 = vsel %vm96_vm1, %v87_v13, %v89_v50  ;;  %v69_v16 = vsel %vm68_vm0, %v59_v14, %v61_v45  ;;  %v287_v18 = vld [vmem:[#allocation2 + $0x28] sm:$0xff] }
  0xa0   :  { %105 = vst [vmem:[#allocation2 + $0x20] ss:$-28 sps:$4 sm:$0xc1] %v97_v15   ;;  %77 = vst [vmem:[#allocation2] sm:$0x38] %v69_v16  ;;  %v551_v19 = vpack.c.bf16 %v287_v18, %v283_v17  ;;  %v281_v13 = vld [vmem:[%s791_s2 + $0x8] sm:$0xff] }
  0xa2   :  { %v147_v20 = vpop.permute.xlu1 %146  ;;  %v119_v21 = vpop.permute.xlu0 %118  ;;  %552 = vmatprep.subr.bf16.mxu0 %v551_v19 }
  0xa3   :  { %v157_v23 = vsel %vm156_vm3, %v147_v20, %v149_v0  ;;  %v129_v24 = vsel %vm128_vm2, %v119_v21, %v121_v57  ;;  %v289_v25 = vld [vmem:[#allocation2 + $0x38] sm:$0xff]  ;;  %v288_v27 = vld [vmem:[#allocation2 + $0x30] sm:$0xff] }
  0xa4   :  { %165 = vst [vmem:[#allocation2 + $0x20] sm:$0x70] %v157_v23  ;;  %137 = vst [vmem:[#allocation2 + $0x20] sm:$0xe] %v129_v24  ;;  %v561_v28 = vpack.c.bf16 %v289_v25, %v285_v22  ;;  %v563_v29 = vpack.c.bf16 %v288_v27, %v284_v26 }
  0xa6   :  { %v209_v30 = vpop.permute.xlu1 %208  ;;  %562 = vmatprep.subr.bf16.mxu1 %v561_v28  ;;  %v175_v31 = vpop.permute.xlu0 %174 }
  0xa7   :  { %v185_v32 = vsel %vm184_vm4, %v175_v31, %v177_v7  ;;  %564 = vmatpush1.bf16.msra.mxu1 %v563_v29  ;;  %v282_v41 = vld [vmem:[#allocation2] sm:$0xff] }
  0xa8   :  { %193 = vst [vmem:[#allocation2 + $0x40] ss:$-28 sps:$4 sm:$0x83] %v185_v32  }
  0xaa   :  { %v213_v33 = vpop.permute.xlu1 %212  ;;  %v211_v34 = vpop.permute.xlu0 %210 }
  0xab   :  { %v218_v35 = vsel %vm216_vm5, %v209_v30, %v211_v34  ;;  %v219_v36 = vsel %vm216_vm5, %v211_v34, %v213_v33 }
  0xac   :  { %226 = vst [vmem:[#allocation2 + $0x48] sm:$0x1c] %v218_v35  ;;  %227 = vst [vmem:[#allocation2 + $0x50] sm:$0x1c] %v219_v36 }
  0xae   :  { %v237_v37 = vpop.permute.xlu1 %236  ;;  %v215_v39 = vpop.permute.xlu0 %214 }
  0xaf   :  { %v220_v40 = vsel %vm216_vm5, %v213_v33, %v215_v39  ;;  %v286_v42 = vld [vmem:[#allocation2 + $0x20] sm:$0xff] }
  0xb0   :  { %228 = vst [vmem:[#allocation2 + $0x58] sm:$0x1c] %v220_v40  ;;  %v553_v43 = vpack.c.bf16 %v286_v42, %v282_v41 }
  0xb2   :  { %v241_v44 = vpop.permute.xlu1 %240  ;;  %v239_v45 = vpop.permute.xlu0 %238  ;;  %554 = vmatpush1.bf16.msra.mxu0 %v553_v43 }
  0xb3   :  { %v246_v46 = vsel %vm244_vm6, %v237_v37, %v239_v45  ;;  %v247_v47 = vsel %vm244_vm6, %v239_v45, %v241_v44 }
  0xb4   :  { %254 = vst [vmem:[#allocation2 + $0x48] sm:$0xe0] %v246_v46  ;;  %255 = vst [vmem:[#allocation2 + $0x50] sm:$0xe0] %v247_v47 }
  0xb6   :  { %v260_v48 = vpop.permute.xlu1 %259  ;;  %v243_v49 = vpop.permute.xlu0 %242 }
  0xb7   :  { %v248_v50 = vsel %vm244_vm6, %v241_v44, %v243_v49 }
  0xb8   :  { %256 = vst [vmem:[#allocation2 + $0x58] sm:$0xe0] %v248_v50 }
  0xba   :  { %v264_v51 = vpop.permute.xlu1 %263  ;;  %v262_v52 = vpop.permute.xlu0 %261 }
  0xbb   :  { %v269_v53 = vsel %vm267_vm7, %v260_v48, %v262_v52  ;;  %v270_v54 = vsel %vm267_vm7, %v262_v52, %v264_v51  ;;  %v291_v63 = vld [vmem:[#allocation2 + $0x48] sm:$0xff]  ;;  %v292_v7 = vld [vmem:[#allocation2 + $0x50] sm:$0xff] }
  0xbc   :  { %277 = vst [vmem:[#allocation2 + $0x68] sm:$0x7] %v269_v53  ;;  %278 = vst [vmem:[#allocation2 + $0x70] sm:$0x7] %v270_v54 }
  0xbe   :  { %v207_v55 = vpop.permute.xlu1 %206  ;;  %v266_v56 = vpop.permute.xlu0 %265 }
  0xbf   :  { %v217_v57 = vsel %vm216_vm5, %v207_v55, %v209_v30  ;;  %v271_v58 = vsel %vm267_vm7, %v264_v51, %v266_v56  ;;  %v293_v4 = vld [vmem:[#allocation2 + $0x58] sm:$0xff] }
  0xc0   :  { %225 = vst [vmem:[#allocation2 + $0x40] sm:$0x1c] %v217_v57  ;;  %279 = vst [vmem:[#allocation2 + $0x78] sm:$0x7] %v271_v58 }
  0xc2   :  { %v258_v59 = vpop.permute.xlu1 %257  ;;  %v235_v60 = vpop.permute.xlu0 %234 }
  0xc3   :  { %v268_v61 = vsel %vm267_vm7, %v258_v59, %v260_v48  ;;  %v245_v62 = vsel %vm244_vm6, %v235_v60, %v237_v37  ;;  %v295_v0 = vld [vmem:[#allocation2 + $0x68] sm:$0x7]  ;;  %v296_v3 = vld [vmem:[#allocation2 + $0x70] sm:$0x7] }
  0xc4   :  { %276 = vst [vmem:[#allocation2 + $0x60] sm:$0x7] %v268_v61  ;;  %253 = vst [vmem:[#allocation2 + $0x40] sm:$0xe0] %v245_v62  ;;  %v555_v2 = vpack.c.bf16 %v295_v0, %v291_v63  ;;  %v568_v8 = vpack.c.bf16 %v296_v3, %v292_v7 }
  0xc6   :  { %557 = vmatprep.subr.msk.bf16.mxu0 %vm744_vm10, %v555_v2 }
  0xc7   :  { %v297_v5 = vld [vmem:[#allocation2 + $0x78] sm:$0x7] }
  0xc8   :  { %v565_v6 = vpack.c.bf16 %v297_v5, %v293_v4 }
  0xca   :  { %567 = vmatprep.subr.msk.bf16.mxu1 %vm744_vm10, %v565_v6 }
  0xcb   :  { %570 = vmatpush1.bf16.msk.msra.mxu1 %vm744_vm10, %v568_v8  ;;  %v290_v9 = vld [vmem:[#allocation2 + $0x40] sm:$0xff] }
  0xcc   :  { %v294_v10 = vld [vmem:[#allocation2 + $0x60] sm:$0x7] }
  0xcd   :  { %v558_v12 = vpack.c.bf16 %v294_v10, %v290_v9 }
  0xce   :  { %549 = vmatmul.mubr.msk.f32.vlgmr.msra.gmra.mrb[0].mxu1 %vm310_vm11, %v280_v11 }
  0xcf   :  { %560 = vmatpush1.bf16.msk.msra.mxu0 %vm744_vm10, %v558_v12  ;;  %477 = vmatprep.mubr.f32.mxu1 %v594_v38 }
  0xd2   :  { %545 = vmatmul.mubr.msk.f32.vlgmr.msra.gmra.mrb[0].mxu0 %vm310_vm11, %v280_v11  ;;  %550 = vmatmul.mubr.msk.f32.gmra.mrb[2].mxu1 %vm310_vm11, %v281_v13 }
  0xd3   :  { %400 = vmatprep.mubr.f32.mxu0 %v594_v38  ;;  %v303_v14 = vpop.permute.xlu0 %302  ;;  %v308_v19 = vpop.permute.xlu1 %307 }
  0xd6   :  { %546 = vmatmul.mubr.msk.f32.gmra.mrb[2].mxu0 %vm310_vm11, %v281_v13 }
 0x1a1   :  { %v473_v15 = vpop.f32.mrb[0].mxu1 }
 0x1a2   :  { %v475_v16 = vpop.f32.mrb[1].mxu1  ;;  %v474_v17 = vadd.f32 %v473_v15, %v303_v14 }
 0x1a3   :  { %v476_v18 = vadd.f32 %v475_v16, %v303_v14 }
 0x1a4   :  { %v486_v20 = vmax.f32 %v474_v17, 0.0  ;;  %v494_v21 = vadd.f32 3.0, %v474_v17 }
 0x1a5   :  { %v396_v22 = vpop.f32.mrb[0].mxu0  ;;  %v487_v23 = vmax.f32 %v476_v18, 0.0  ;;  %v495_v24 = vadd.f32 3.0, %v476_v18  ;;  %v479_v27 = vpop.f32.mrb[2].mxu1 }
 0x1a6   :  { %v397_v25 = vadd.f32 %v396_v22, %v303_v14  ;;  %v398_v26 = vpop.f32.mrb[1].mxu0  ;;  %v502_v28 = vmin.f32 %v494_v21, 6.0  ;;  %v480_v30 = vadd.f32 %v479_v27, %v308_v19  ;;  %v481_v31 = vpop.f32.mrb[3].mxu1 }
 0x1a7   :  { %v399_v29 = vadd.f32 %v398_v26, %v303_v14  ;;  %v503_v38 = vmin.f32 %v495_v24, 6.0  ;;  %v482_v34 = vadd.f32 %v481_v31, %v308_v19 }
 0x1a8   :  { %v484_v32 = vmax.f32 %v397_v25, 0.0  ;;  %v492_v33 = vadd.f32 3.0, %v397_v25  ;;  %v510_v35 = vmul.f32 %v502_v28, %v486_v20  ;;  %v490_v39 = vmax.f32 %v480_v30, 0.0 }
 0x1a9   :  { %v485_v36 = vmax.f32 %v399_v29, 0.0  ;;  %v493_v37 = vadd.f32 3.0, %v399_v29  ;;  %v402_v40 = vpop.f32.mrb[2].mxu0  ;;  %v511_v41 = vmul.f32 %v503_v38, %v487_v23  ;;  %v498_v43 = vadd.f32 3.0, %v480_v30 }
 0x1aa   :  { %v500_v42 = vmin.f32 %v492_v33, 6.0  ;;  %v491_v44 = vmax.f32 %v482_v34, 0.0  ;;  %v404_v45 = vpop.f32.mrb[3].mxu0  ;;  %v518_v46 = vmul.f32 0.16666667, %v510_v35  ;;  %v499_v48 = vadd.f32 3.0, %v482_v34 }
 0x1ab   :  { %v501_v47 = vmin.f32 %v493_v37, 6.0  ;;  %v403_v49 = vadd.f32 %v402_v40, %v308_v19  ;;  %v519_v50 = vmul.f32 0.16666667, %v511_v41  ;;  %v506_v52 = vmin.f32 %v498_v43, 6.0 }
 0x1ac   :  { %v508_v51 = vmul.f32 %v500_v42, %v484_v32  ;;  %v405_v53 = vadd.f32 %v404_v45, %v308_v19  ;;  %526 = vst [vmem:[%s792_s4 + $0x10] sm:$0xff] %v518_v46  ;;  %v507_v55 = vmin.f32 %v499_v48, 6.0 }
 0x1ad   :  { %v509_v54 = vmul.f32 %v501_v47, %v485_v36  ;;  %v496_v56 = vadd.f32 3.0, %v403_v49  ;;  %527 = vst [vmem:[%s792_s4 + $0x18] sm:$0xff] %v519_v50  ;;  %v514_v58 = vmul.f32 %v506_v52, %v490_v39  ;;  %v488_v62 = vmax.f32 %v403_v49, 0.0 }
 0x1ae   :  { %v516_v57 = vmul.f32 0.16666667, %v508_v51  ;;  %v497_v59 = vadd.f32 3.0, %v405_v53  ;;  %v515_v61 = vmul.f32 %v507_v55, %v491_v44  ;;  %v489_v1 = vmax.f32 %v405_v53, 0.0 }
 0x1af   :  { %v517_v60 = vmul.f32 0.16666667, %v509_v54  ;;  %v504_v63 = vmin.f32 %v496_v56, 6.0  ;;  %v522_v0 = vmul.f32 0.16666667, %v514_v58 }
 0x1b0   :  { %524 = vst [vmem:[%s792_s4] sm:$0xff] %v516_v57  ;;  %v505_v2 = vmin.f32 %v497_v59, 6.0  ;;  %v523_v3 = vmul.f32 0.16666667, %v515_v61 }
 0x1b1   :  { %525 = vst [vmem:[%s792_s4 + $0x8] sm:$0xff] %v517_v60  ;;  %v512_v4 = vmul.f32 %v504_v63, %v488_v62  ;;  %530 = vst [vmem:[%s792_s4 + $0x30] sm:$0xff] %v522_v0 }
 0x1b2   :  { %v513_v5 = vmul.f32 %v505_v2, %v489_v1  ;;  %531 = vst [vmem:[%s792_s4 + $0x38] sm:$0xff] %v523_v3 }
 0x1b3   :  { %v520_v6 = vmul.f32 0.16666667, %v512_v4 }
 0x1b4   :  { %v521_v7 = vmul.f32 0.16666667, %v513_v5 }
 0x1b5   :  { %528 = vst [vmem:[%s792_s4 + $0x20] sm:$0xff] %v520_v6 }
 0x1b6   :  { %529 = vst [vmem:[%s792_s4 + $0x28] sm:$0xff] %v521_v7 }

</bundles_post_ra>
